<compile_context>
chip_gen: v7x
topology: tpu7x:2x2x1
jax: 0.10.0
libtpu: 0.0.40
codegen_flags: <defaults>
</compile_context>

<pallas_src>
import jax
import jax.numpy as jnp
from jax.experimental import pallas as pl
from jax.experimental.pallas import tpu as pltpu


def _round_up(n, m):
    return ((n + m - 1) // m) * m


def _mlp_kernel(x_ref, w1_ref, b1_ref, w2_ref, b2_ref, w3t_ref, b3t_ref, o_ref):
    x = x_ref[...]                                                    # (tb, F)

    # layer_1 (+ folded BN1) + ReLU                                   -> (tb, H5p) f32
    h1 = jnp.dot(x, w1_ref[...], preferred_element_type=jnp.float32) + b1_ref[...]
    h1 = jnp.maximum(h1, 0.0)

    # layer_2 (+ folded BN2) + ReLU                                   -> (tb, H3p) f32
    h2 = jnp.dot(h1.astype(w2_ref.dtype), w2_ref[...],
                 preferred_element_type=jnp.float32) + b2_ref[...]
    h2 = jnp.maximum(h2, 0.0)

    # output layer computed transposed: (Opad, H3p) @ (H3p, tb) -> (Opad, tb).
    # Batch lives on the lane axis -> the sigmoid touches only a few vregs and the
    # store is a lane-dense (O, tb) slab (no 128-wide padded writeback).
    h2t = h2.T                                                        # (H3p, tb) f32 (XLU)
    logits_t = jnp.dot(w3t_ref[...], h2t.astype(w3t_ref.dtype),
                       preferred_element_type=jnp.float32) + b3t_ref[...]
    o_rows = o_ref.shape[0]                                           # static (= O)
    o_ref[...] = jax.nn.sigmoid(logits_t[:o_rows, :])


def prepare_params(params, compute_dtype=jnp.bfloat16):
    """Fold eval-mode BatchNorm into the Linears and zero-pad to TPU-friendly shapes.

    Call ONCE at model-load time (hoisted out of the per-batch hot path)."""
    eps = 1e-5
    w1, b1 = params["w1"], params["b1"]
    w2, b2 = params["w2"], params["b2"]
    w3, b3 = params["w3"], params["b3"]

    # BN fold: W' = W * s, b' = b * s + t   (constant fold on the weights, not on x).
    s1 = params["gamma1"] * jax.lax.rsqrt(params["var1"] + eps)
    t1 = params["beta1"] - params["mean1"] * s1
    s2 = params["gamma2"] * jax.lax.rsqrt(params["var2"] + eps)
    t2 = params["beta2"] - params["mean2"] * s2
    w1f, b1f = w1 * s1[None, :], b1 * s1 + t1
    w2f, b2f = w2 * s2[None, :], b2 * s2 + t2

    F, H5 = w1.shape
    H3, O = w3.shape
    H5p, H3p = _round_up(H5, 128), _round_up(H3, 128)
    Ors = _round_up(O, 8)   # sublane-aligned row count for the transposed output layer

    def pad2(a, rows, cols):
        return jnp.pad(a, ((0, rows - a.shape[0]), (0, cols - a.shape[1])))

    def row(b, cols):
        return jnp.pad(b, (0, cols - b.shape[0])).reshape(1, -1)

    return dict(
        w1=pad2(w1f, F, H5p).astype(compute_dtype),
        b1=row(b1f, H5p).astype(jnp.float32),
        w2=pad2(w2f, H5p, H3p).astype(compute_dtype),
        b2=row(b2f, H3p).astype(jnp.float32),
        # output layer stored transposed: (Ors, H3p), bias as a lane-broadcastable column
        w3t=pad2(w3.T, Ors, H3p).astype(compute_dtype),
        b3t=jnp.pad(b3, (0, Ors - O)).reshape(-1, 1).astype(jnp.float32),
    )


def mlp_forward(x, prep, out_features, *, tb=None):
    """Fused MLP forward.  x: (B, input_size).  Returns (B, out_features) float32."""
    B, F = x.shape
    cd = prep["w1"].dtype
    H5p = prep["w1"].shape[1]
    H3p = prep["w2"].shape[1]
    Ors = prep["w3t"].shape[0]
    O = out_features

    if tb is None:
        # Multiple of 128 (dense transposed store), >= 2 grid steps when the batch
        # allows (v7x has 2 TensorCores), capped at 2048 (VMEM / pipeline comfort).
        tb = min(2048, max(128, _round_up(pl.cdiv(B, 8), 128)))
    else:
        tb = _round_up(tb, 128)
    Bp = _round_up(B, tb)

    xp = x.astype(cd)
    if Bp != B:
        xp = jnp.pad(xp, ((0, Bp - B), (0, 0)))

    full = lambda shape: pl.BlockSpec(shape, lambda i: (0, 0))   # resident params

    out_t = pl.pallas_call(
        _mlp_kernel,
        out_shape=jax.ShapeDtypeStruct((O, Bp), jnp.float32),
        grid=(Bp // tb,),
        in_specs=[
            pl.BlockSpec((tb, F), lambda i: (i, 0)),   # x, tiled over batch
            full((F, H5p)), full((1, H5p)),
            full((H5p, H3p)), full((1, H3p)),
            full((Ors, H3p)), full((Ors, 1)),
        ],
        out_specs=pl.BlockSpec((O, tb), lambda i: (0, i)),        # lane-dense store
        compiler_params=pltpu.CompilerParams(
            dimension_semantics=("parallel",),
            vmem_limit_bytes=32 * 1024 * 1024),
    )(xp, prep["w1"], prep["b1"], prep["w2"], prep["b2"], prep["w3t"], prep["b3t"])

    # (O, Bp) lane-dense kernel output -> user-facing (B, O); padded batch cols dropped.
    return out_t[:, :B].T


def init_params(key, input_size, hidden_size, output_size):
    """Deterministic synthetic parameters (shapes match the PyTorch module)."""
    h5 = hidden_size * 5
    h3 = hidden_size * 3
    ks = jax.random.split(key, 10)

    def lin(kw, kb, fan_in, fan_out):
        bound = 1.0 / jnp.sqrt(fan_in)
        # stored as (in, out) == PyTorch weight.T
        w = jax.random.uniform(kw, (fan_in, fan_out), jnp.float32, -bound, bound)
        b = jax.random.uniform(kb, (fan_out,), jnp.float32, -bound, bound)
        return w, b

    w1, b1 = lin(ks[0], ks[1], input_size, h5)
    w2, b2 = lin(ks[2], ks[3], h5, h3)
    w3, b3 = lin(ks[4], ks[5], h3, output_size)

    mean1 = 0.05 * jax.random.normal(ks[6], (h5,), jnp.float32)
    var1 = 1.0 + 0.1 * jnp.abs(jax.random.normal(ks[7], (h5,), jnp.float32))
    mean2 = 0.05 * jax.random.normal(ks[8], (h3,), jnp.float32)
    var2 = 1.0 + 0.1 * jnp.abs(jax.random.normal(ks[9], (h3,), jnp.float32))

    return dict(
        w1=w1, b1=b1, gamma1=jnp.ones((h5,), jnp.float32),
        beta1=jnp.zeros((h5,), jnp.float32), mean1=mean1, var1=var1,
        w2=w2, b2=b2, gamma2=jnp.ones((h3,), jnp.float32),
        beta2=jnp.zeros((h3,), jnp.float32), mean2=mean2, var2=var2,
        w3=w3, b3=b3,
    )


def reference_forward(x, params):
    """Pure-JAX reference of the same (eval-mode) forward pass."""
    eps = 1e-5
    h = x @ params["w1"] + params["b1"]
    h = (h - params["mean1"]) / jnp.sqrt(params["var1"] + eps) * params["gamma1"] + params["beta1"]
    h = jnp.maximum(h, 0.0)
    c = h @ params["w2"] + params["b2"]
    c = (c - params["mean2"]) / jnp.sqrt(params["var2"] + eps) * params["gamma2"] + params["beta2"]
    c = jnp.maximum(c, 0.0)
    out = c @ params["w3"] + params["b3"]
    return jax.nn.sigmoid(out)


if __name__ == "__main__":
    input_size, hidden_size, output_size = 16, 32, 2
    batch = 16

    key = jax.random.PRNGKey(0)
    kx, kp = jax.random.split(key)
    x = jax.random.normal(kx, (batch, input_size), jnp.float32)
    params = init_params(kp, input_size, hidden_size, output_size)

    ref = reference_forward(x, params)

    # f32 compute path — exact match with the reference.
    prep_f32 = prepare_params(params, compute_dtype=jnp.float32)   # one-time prep
    out = jax.block_until_ready(mlp_forward(x, prep_f32, output_size))
    assert out.shape == (batch, output_size)
    assert jnp.allclose(out, ref, atol=1e-5, rtol=1e-4), "f32 mismatch vs reference"

    # bf16 weights/activations (default batched-inference path) — loose tolerance.
    prep_bf16 = prepare_params(params)                              # bf16 by default
    out_bf16 = jax.block_until_ready(mlp_forward(x, prep_bf16, output_size))
    assert out_bf16.shape == (batch, output_size)
    assert jnp.max(jnp.abs(out_bf16 - ref)) < 5e-2, "bf16 mismatch vs reference"

    print("KERNEL_OK")
</pallas_src>

<mosaic_0001>
module attributes {stable_mosaic.version = 11 : i64} {
  func.func @_mlp_kernel(%arg0: i32, %arg1: memref<128x16xf32, #tpu.memory_space<vmem>>, %arg2: memref<16x256xf32, #tpu.memory_space<vmem>>, %arg3: memref<1x256xf32, #tpu.memory_space<vmem>>, %arg4: memref<256x128xf32, #tpu.memory_space<vmem>>, %arg5: memref<1x128xf32, #tpu.memory_space<vmem>>, %arg6: memref<8x128xf32, #tpu.memory_space<vmem>>, %arg7: memref<8x1xf32, #tpu.memory_space<vmem>>, %arg8: memref<2x128xf32, #tpu.memory_space<vmem>>) attributes {dimension_semantics = [#tpu.dimension_semantics<parallel>], iteration_bounds = array<i64: 1>, scalar_prefetch = 0 : i64, scratch_operands = 0 : i64, tpu.core_type = #tpu.core_type<tc>, window_params = [{transform_indices = @transform_0, window_bounds = array<i64: 128, 16>}, {pipeline_mode = #tpu.pipeline_mode<synchronous>, transform_indices = @transform_1, window_bounds = array<i64: 16, 256>}, {pipeline_mode = #tpu.pipeline_mode<synchronous>, transform_indices = @transform_2, window_bounds = array<i64: 1, 256>}, {pipeline_mode = #tpu.pipeline_mode<synchronous>, transform_indices = @transform_3, window_bounds = array<i64: 256, 128>}, {pipeline_mode = #tpu.pipeline_mode<synchronous>, transform_indices = @transform_4, window_bounds = array<i64: 1, 128>}, {pipeline_mode = #tpu.pipeline_mode<synchronous>, transform_indices = @transform_5, window_bounds = array<i64: 8, 128>}, {pipeline_mode = #tpu.pipeline_mode<synchronous>, transform_indices = @transform_6, window_bounds = array<i64: 8, 1>}, {transform_indices = @transform_7, window_bounds = array<i64: 2, 128>}]} {
    %c0 = arith.constant 0 : index
    %c0_0 = arith.constant 0 : index
    %0 = vector.load %arg1[%c0, %c0_0] : memref<128x16xf32, #tpu.memory_space<vmem>>, vector<128x16xf32>
    %c0_1 = arith.constant 0 : index
    %c0_2 = arith.constant 0 : index
    %1 = vector.load %arg2[%c0_1, %c0_2] : memref<16x256xf32, #tpu.memory_space<vmem>>, vector<16x256xf32>
    %cst = arith.constant dense<0.000000e+00> : vector<128x256xf32>
    %2 = tpu.matmul %0, %1, %cst {dimension_numbers = #tpu.dot_dimension_numbers<[1], [0], [0], [1], [0, 0, 1, 1], [], []>} : vector<128x16xf32>, vector<16x256xf32>, vector<128x256xf32> -> vector<128x256xf32>
    %c0_3 = arith.constant 0 : index
    %c0_4 = arith.constant 0 : index
    %3 = vector.load %arg3[%c0_3, %c0_4] : memref<1x256xf32, #tpu.memory_space<vmem>>, vector<1x256xf32>
    %4 = vector.broadcast %3 : vector<1x256xf32> to vector<128x256xf32>
    %5 = arith.addf %2, %4 : vector<128x256xf32>
    %cst_5 = arith.constant 0.000000e+00 : f32
    %6 = vector.broadcast %cst_5 : f32 to vector<128x256xf32>
    %7 = arith.maximumf %5, %6 : vector<128x256xf32>
    %c0_6 = arith.constant 0 : index
    %c0_7 = arith.constant 0 : index
    %8 = vector.load %arg4[%c0_6, %c0_7] : memref<256x128xf32, #tpu.memory_space<vmem>>, vector<256x128xf32>
    %cst_8 = arith.constant dense<0.000000e+00> : vector<128x128xf32>
    %9 = tpu.matmul %7, %8, %cst_8 {dimension_numbers = #tpu.dot_dimension_numbers<[1], [0], [0], [1], [0, 0, 1, 1], [], []>} : vector<128x256xf32>, vector<256x128xf32>, vector<128x128xf32> -> vector<128x128xf32>
    %c0_9 = arith.constant 0 : index
    %c0_10 = arith.constant 0 : index
    %10 = vector.load %arg5[%c0_9, %c0_10] : memref<1x128xf32, #tpu.memory_space<vmem>>, vector<1x128xf32>
    %11 = vector.broadcast %10 : vector<1x128xf32> to vector<128x128xf32>
    %12 = arith.addf %9, %11 : vector<128x128xf32>
    %cst_11 = arith.constant 0.000000e+00 : f32
    %13 = vector.broadcast %cst_11 : f32 to vector<128x128xf32>
    %14 = arith.maximumf %12, %13 : vector<128x128xf32>
    %15 = tpu.transpose %14, [1, 0] : vector<128x128xf32> -> vector<128x128xf32>
    %c0_12 = arith.constant 0 : index
    %c0_13 = arith.constant 0 : index
    %16 = vector.load %arg6[%c0_12, %c0_13] : memref<8x128xf32, #tpu.memory_space<vmem>>, vector<8x128xf32>
    %cst_14 = arith.constant dense<0.000000e+00> : vector<8x128xf32>
    %17 = tpu.matmul %16, %15, %cst_14 {dimension_numbers = #tpu.dot_dimension_numbers<[1], [0], [0], [1], [0, 0, 1, 1], [], []>} : vector<8x128xf32>, vector<128x128xf32>, vector<8x128xf32> -> vector<8x128xf32>
    %c0_15 = arith.constant 0 : index
    %c0_16 = arith.constant 0 : index
    %18 = vector.load %arg7[%c0_15, %c0_16] : memref<8x1xf32, #tpu.memory_space<vmem>>, vector<8x1xf32>
    %19 = vector.broadcast %18 : vector<8x1xf32> to vector<8x128xf32>
    %20 = arith.addf %17, %19 : vector<8x128xf32>
    %21 = vector.extract_strided_slice %20 {offsets = [0, 0], sizes = [2, 128], strides = [1, 1]} : vector<8x128xf32> to vector<2x128xf32>
    %22 = arith.negf %21 : vector<2x128xf32>
    %23 = math.exp %22 : vector<2x128xf32>
    %cst_17 = arith.constant 1.000000e+00 : f32
    %24 = vector.broadcast %cst_17 : f32 to vector<2x128xf32>
    %25 = arith.addf %24, %23 : vector<2x128xf32>
    %26 = arith.divf %24, %25 : vector<2x128xf32>
    %c0_18 = arith.constant 0 : index
    %c0_19 = arith.constant 0 : index
    %27 = vector.load %arg8[%c0_18, %c0_19] : memref<2x128xf32, #tpu.memory_space<vmem>>, vector<2x128xf32>
    tpu.vector_store %arg8[%c0_18, %c0_19], %26 {strides = array<i32>} : memref<2x128xf32, #tpu.memory_space<vmem>>, vector<2x128xf32>,
    return
  }
  func.func @transform_0(%arg0: i32) -> (i32, i32) {
    %c0_i32 = arith.constant 0 : i32
    %c0_i32_0 = arith.constant 0 : i32
    return %arg0, %c0_i32 : i32, i32
  }
  func.func @transform_1(%arg0: i32) -> (i32, i32) {
    %c0_i32 = arith.constant 0 : i32
    %c0_i32_0 = arith.constant 0 : i32
    %c0_i32_1 = arith.constant 0 : i32
    return %c0_i32, %c0_i32_0 : i32, i32
  }
  func.func @transform_2(%arg0: i32) -> (i32, i32) {
    %c0_i32 = arith.constant 0 : i32
    %c0_i32_0 = arith.constant 0 : i32
    %c0_i32_1 = arith.constant 0 : i32
    return %c0_i32, %c0_i32_0 : i32, i32
  }
  func.func @transform_3(%arg0: i32) -> (i32, i32) {
    %c0_i32 = arith.constant 0 : i32
    %c0_i32_0 = arith.constant 0 : i32
    %c0_i32_1 = arith.constant 0 : i32
    return %c0_i32, %c0_i32_0 : i32, i32
  }
  func.func @transform_4(%arg0: i32) -> (i32, i32) {
    %c0_i32 = arith.constant 0 : i32
    %c0_i32_0 = arith.constant 0 : i32
    %c0_i32_1 = arith.constant 0 : i32
    return %c0_i32, %c0_i32_0 : i32, i32
  }
  func.func @transform_5(%arg0: i32) -> (i32, i32) {
    %c0_i32 = arith.constant 0 : i32
    %c0_i32_0 = arith.constant 0 : i32
    %c0_i32_1 = arith.constant 0 : i32
    return %c0_i32, %c0_i32_0 : i32, i32
  }
  func.func @transform_6(%arg0: i32) -> (i32, i32) {
    %c0_i32 = arith.constant 0 : i32
    %c0_i32_0 = arith.constant 0 : i32
    %c0_i32_1 = arith.constant 0 : i32
    return %c0_i32, %c0_i32_0 : i32, i32
  }
  func.func @transform_7(%arg0: i32) -> (i32, i32) {
    %c0_i32 = arith.constant 0 : i32
    %c0_i32_0 = arith.constant 0 : i32
    return %c0_i32, %arg0 : i32, i32
  }
}

</mosaic_0001>

<bundles_post_ra>
// kernel: tpu_custom_call.1
= control target key start
LH: loop header
LB: loop body
LE: loop exit
PB: predicated region body
PF: predicated region fallthrough
CT: control target
= control target key end

     0   :  { %12 = vsyncpa [#allocation3], 0  ;;  %s1124_s0 = inlined_call_operand.vmem [shape: f32[128,16], index: 0, kind: input, shape index: {}]   ;;  %s1125_s1 = inlined_call_operand.vmem [shape: f32[16,256], index: 1, kind: input, shape index: {}]   ;;  %s1126_s2 = inlined_call_operand.vmem [shape: f32[1,256], index: 2, kind: input, shape index: {}]   ;;  %s1127_s3 = inlined_call_operand.hbm [shape: f32[256,128], index: 3, kind: input, shape index: {}]   ;;  %s1128_s4 = inlined_call_operand.vmem [shape: f32[1,128], index: 4, kind: input, shape index: {}]   ;;  %s1129_s5 = inlined_call_operand.vmem [shape: f32[8,128], index: 5, kind: input, shape index: {}]   ;;  %s1130_s6 = inlined_call_operand.vmem [shape: f32[8,1], index: 6, kind: input, shape index: {}]   ;;  %s1131_s7 = inlined_call_operand.hbm [shape: f32[2,128], index: 7, kind: output, shape index: {}]  }
   0x1   :  { %13 = vsyncpa [#allocation4], 0  ;;  %s885_s24 = smov [#allocation2]   ;;  %s837_s28 = scalar_lea.hbm %s1127_s3, 4096 }
   0x2   :  { %s25_s25 = sshll.u32 %s885_s24, 4  ;;  %p838_p0 = scmp.ne.s32.totalorder %s1127_s3, %s837_s28  ;;  %s26_s25 = int_to_ptr.vmem [resolvable:$true] %s25_s25 }
   0x3   :  { %p841_p1 = scmp.lt.u32.totalorder %s837_s28, %s1127_s3 }
   0x5   :  { %p843_p2 = pnand %p841_p1, %p838_p0 }
   0x7   :  { %846 = shalt.err (!%p843_p2)
}
   0x8   :  { %s847_s10 = scalar_lea.vmem %s26_s25, 4096  ;;  %p852_p4 = scmp.lt.s32.totalorder %s26_s25, %s26_s25 }
   0x9   :  { %p848_p3 = scmp.ne.s32.totalorder %s26_s25, %s847_s10  ;;  %p853_p5 = scmp.lt.s32.totalorder %s847_s10, %s847_s10 }
   0xb   :  { %p854_p6 = por %p853_p5, %p852_p4 }
   0xd   :  { %p855_p7 = pnand %p854_p6, %p848_p3 }
   0xf   :  { %858 = shalt.err (!%p855_p7)
}
  0x10   :  { %s886_s11 = smov 128   ;;  %s887_s12 = smov 8  }
  0x11   :  { %31 = dma.hbm_to_vmem [thread:$0]  %s1127_s3, 4096, %s26_s25, [#allocation3], %s886_s11, %s886_s11, %s887_s12  }
  0x12   :  { %881 = dma.done.wait [#allocation3], 4096  }
  0x13   :  { %882 = vsyncadd [#allocation3], 4294963200  ;;  %v888_v0 = vmov 0.0   ;;  %v58_v1 = vld [vmem:[%s1125_s1 + $0x8] sm:$0xff]  ;;  %v60_v2 = vld [vmem:[%s1125_s1 + $0x18] sm:$0xff]  ;;  %vm73_vm0 = vcmask 130048  }
  0x14   :  { %186 = vmatprep.mubr.f32.mxu0 %v888_v0  ;;  %v57_v3 = vld [vmem:[%s1125_s1] sm:$0xff]  ;;  %v764_v4 = vpack.c.bf16 %v60_v2, %v58_v1  ;;  %v59_v5 = vld [vmem:[%s1125_s1 + $0x10] sm:$0xff]  ;;  %v42_v8 = vld [vmem:[%s1124_s0 + $0x8] sm:$0xff]  ;;  %vm890_vm1 = vmmov 0   ;;  %s892_s9 = smov [#allocation5]  }
  0x15   :  { %v766_v6 = vpack.c.bf16 %v59_v5, %v57_v3  ;;  %v41_v7 = vld [vmem:[%s1124_s0] sm:$0xff]  ;;  %v332_v10 = vld [vmem:[#allocation2 + $0x88] sm:$0xff]  ;;  %v333_v15 = vld [vmem:[#allocation2 + $0x90] sm:$0xff]  ;;  %s605_s10 = sshll.u32 %s892_s9, 4  ;;  %s606_s10 = int_to_ptr.vmem [resolvable:$true] %s605_s10 }
  0x16   :  { %765 = vmatprep.subr.bf16.mxu0 %v764_v4  ;;  %v331_v9 = vld [vmem:[#allocation2 + $0x80] sm:$0xff]  ;;  %v316_v12 = vld [vmem:[#allocation2 + $0x8] sm:$0xff]  ;;  %v334_v16 = vld [vmem:[#allocation2 + $0x98] sm:$0xff]  ;;  %s859_s11 = scalar_lea.vmem %s606_s10, 32  ;;  %p864_p9 = scmp.lt.s32.totalorder %s606_s10, %s606_s10 }
  0x17   :  { %767 = vmatpush1.bf16.msra.mxu0 %v766_v6  ;;  %v315_v11 = vld [vmem:[#allocation2] sm:$0xff]  ;;  %v768_v13 = vpack.c.bf16 %v332_v10, %v331_v9  ;;  %v317_v17 = vld [vmem:[#allocation2 + $0x10] sm:$0xff]  ;;  %v772_v18 = vpack.c.bf16 %v334_v16, %v333_v15  ;;  %v318_v19 = vld [vmem:[#allocation2 + $0x18] sm:$0xff]  ;;  %p860_p8 = scmp.ne.s32.totalorder %s606_s10, %s859_s11  ;;  %p865_p10 = scmp.lt.s32.totalorder %s859_s11, %s859_s11 }
  0x18   :  { %v770_v14 = vpack.c.bf16 %v316_v12, %v315_v11  ;;  %v335_v20 = vld [vmem:[#allocation2 + $0xa0] sm:$0xff]  ;;  %v336_v21 = vld [vmem:[#allocation2 + $0xa8] sm:$0xff]  ;;  %v774_v22 = vpack.c.bf16 %v318_v19, %v317_v17  ;;  %v43_v23 = vld [vmem:[%s1124_s0 + $0x10] sm:$0xff] }
  0x19   :  { %769 = vmatprep.subr.bf16.mxu1 %v768_v13  ;;  %v776_v24 = vpack.c.bf16 %v336_v21, %v335_v20  ;;  %v319_v25 = vld [vmem:[#allocation2 + $0x20] sm:$0xff]  ;;  %v320_v26 = vld [vmem:[#allocation2 + $0x28] sm:$0xff]  ;;  %v337_v27 = vld [vmem:[#allocation2 + $0xb0] sm:$0xff]  ;;  %p866_p11 = por %p865_p10, %p864_p9 }
  0x1a   :  { %614 = vmatmul.mubr.msk.f32.vlgmr.msra.gmra.mrb[0].mxu0 %vm73_vm0, %v41_v7  ;;  %771 = vmatpush3.bf16.msra.mxu1 %v770_v14  ;;  %v338_v28 = vld [vmem:[#allocation2 + $0xb8] sm:$0xff]  ;;  %v778_v29 = vpack.c.bf16 %v320_v26, %v319_v25  ;;  %v321_v32 = vld [vmem:[#allocation2 + $0x30] sm:$0xff]  ;;  %v339_v34 = vld [vmem:[#allocation2 + $0xc0] sm:$0xff] }
  0x1b   :  { %192 = vmatprep.mubr.f32.mxu0 %v888_v0  ;;  %773 = vmatprep.subr.bf16.mxu1 %v772_v18  ;;  %v44_v30 = vld [vmem:[%s1124_s0 + $0x18] sm:$0xff]  ;;  %v780_v31 = vpack.c.bf16 %v338_v28, %v337_v27  ;;  %v340_v35 = vld [vmem:[#allocation2 + $0xc8] sm:$0xff]  ;;  %v45_v37 = vld [vmem:[%s1124_s0 + $0x20] sm:$0xff]  ;;  %p867_p12 = pnand %p866_p11, %p860_p8 }
  0x1c   :  { %v322_v33 = vld [vmem:[#allocation2 + $0x38] sm:$0xff]  ;;  %v784_v38 = vpack.c.bf16 %v340_v35, %v339_v34  ;;  %v323_v39 = vld [vmem:[#allocation2 + $0x40] sm:$0xff]  ;;  %v324_v40 = vld [vmem:[#allocation2 + $0x48] sm:$0xff] }
  0x1d   :  { %v782_v36 = vpack.c.bf16 %v322_v33, %v321_v32  ;;  %v341_v41 = vld [vmem:[#allocation2 + $0xd0] sm:$0xff]  ;;  %v342_v42 = vld [vmem:[#allocation2 + $0xd8] sm:$0xff]  ;;  %v786_v43 = vpack.c.bf16 %v324_v40, %v323_v39  ;;  %v46_v44 = vld [vmem:[%s1124_s0 + $0x28] sm:$0xff] }
  0x1e   :  { %615 = vmatmul.mubr.msk.f32.gmra.mrb[2].mxu0 %vm73_vm0, %v42_v8  ;;  %775 = vmatpush3.bf16.msra.mxu1 %v774_v22  ;;  %v788_v45 = vpack.c.bf16 %v342_v42, %v341_v41  ;;  %v325_v46 = vld [vmem:[#allocation2 + $0x50] sm:$0xff]  ;;  %v326_v47 = vld [vmem:[#allocation2 + $0x58] sm:$0xff]  ;;  %v343_v48 = vld [vmem:[#allocation2 + $0xe0] sm:$0xff]  ;;  %v63_v8 = vlaneseq }
  0x1f   :  { %198 = vmatprep.mubr.f32.mxu0 %v888_v0  ;;  %777 = vmatprep.subr.bf16.mxu1 %v776_v24  ;;  %v344_v49 = vld [vmem:[#allocation2 + $0xe8] sm:$0xff]  ;;  %v790_v50 = vpack.c.bf16 %v326_v47, %v325_v46  ;;  %v47_v51 = vld [vmem:[%s1124_s0 + $0x30] sm:$0xff]  ;;  %v48_v53 = vld [vmem:[%s1124_s0 + $0x38] sm:$0xff] }
  0x20   :  { %v792_v52 = vpack.c.bf16 %v344_v49, %v343_v48  ;;  %v49_v54 = vld [vmem:[%s1124_s0 + $0x40] sm:$0xff]  ;;  %v50_v55 = vld [vmem:[%s1124_s0 + $0x48] sm:$0xff]  ;;  %v51_v56 = vld [vmem:[%s1124_s0 + $0x50] sm:$0xff]  ;;  %v64_v9 = vshrl.u32 %v63_v8, 7 }
  0x21   :  { %v52_v57 = vld [vmem:[%s1124_s0 + $0x58] sm:$0xff]  ;;  %v53_v58 = vld [vmem:[%s1124_s0 + $0x60] sm:$0xff]  ;;  %v54_v59 = vld [vmem:[%s1124_s0 + $0x68] sm:$0xff] }
  0x22   :  { %616 = vmatmul.mubr.msk.f32.gmra.mrb[4].mxu0 %vm73_vm0, %v43_v23  ;;  %779 = vmatpush3.bf16.msra.mxu1 %v778_v29  ;;  %v55_v60 = vld [vmem:[%s1124_s0 + $0x70] sm:$0xff]  ;;  %v56_v61 = vld [vmem:[%s1124_s0 + $0x78] sm:$0xff]  ;;  %v327_v62 = vld [vmem:[#allocation2 + $0x60] sm:$0xff]  ;;  %v65_v10 = vsub.s32 0, %v64_v9  ;;  %v69_v12 = vsub.s32 1, %v64_v9 }
  0x23   :  { %204 = vmatprep.mubr.f32.mxu0 %v888_v0  ;;  %781 = vmatprep.subr.bf16.mxu1 %v780_v31  ;;  %v328_v63 = vld [vmem:[#allocation2 + $0x68] sm:$0xff]  ;;  %v345_v2 = vld [vmem:[#allocation2 + $0xf0] sm:$0xff]  ;;  %v346_v3 = vld [vmem:[#allocation2 + $0xf8] sm:$0xff] }
  0x24   :  { %v794_v1 = vpack.c.bf16 %v328_v63, %v327_v62  ;;  %v796_v4 = vpack.c.bf16 %v346_v3, %v345_v2  ;;  %v329_v5 = vld [vmem:[#allocation2 + $0x70] sm:$0xff]  ;;  %v330_v6 = vld [vmem:[#allocation2 + $0x78] sm:$0xff]  ;;  %v61_v11 = vld [vmem:[%s1126_s2] sm:$0x3] }
  0x25   :  { %v798_v7 = vpack.c.bf16 %v330_v6, %v329_v5  ;;  %v1040_v13 = vrot.slane %v61_v11, %v65_v10  ;;  %v1042_v14 = vrot.slane %v61_v11, %v69_v12 }
  0x26   :  { %617 = vmatmul.mubr.msk.f32.gmra.mrb[6].mxu0 %vm73_vm0, %v44_v30  ;;  %783 = vmatpush3.bf16.msra.mxu1 %v782_v36 }
  0x27   :  { %210 = vmatprep.mubr.f32.mxu0 %v888_v0  ;;  %785 = vmatprep.subr.bf16.mxu1 %v784_v38 }
  0x2a   :  { %618 = vmatmul.mubr.msk.f32.gmra.mrb[8].mxu0 %vm73_vm0, %v45_v37  ;;  %787 = vmatpush3.bf16.msra.mxu1 %v786_v43 }
  0x2b   :  { %216 = vmatprep.mubr.f32.mxu0 %v888_v0  ;;  %789 = vmatprep.subr.bf16.mxu1 %v788_v45 }
  0x2e   :  { %619 = vmatmul.mubr.msk.f32.gmra.mrb[10].mxu0 %vm73_vm0, %v46_v44  ;;  %791 = vmatpush3.bf16.msra.mxu1 %v790_v50 }
  0x2f   :  { %222 = vmatprep.mubr.f32.mxu0 %v888_v0  ;;  %793 = vmatprep.subr.bf16.mxu1 %v792_v52 }
  0x32   :  { %620 = vmatmul.mubr.msk.f32.gmra.mrb[12].mxu0 %vm73_vm0, %v47_v51  ;;  %795 = vmatpush3.bf16.msra.mxu1 %v794_v1 }
  0x33   :  { %228 = vmatprep.mubr.f32.mxu0 %v888_v0  ;;  %797 = vmatprep.subr.bf16.mxu1 %v796_v4 }
  0x36   :  { %621 = vmatmul.mubr.msk.f32.gmra.mrb[14].mxu0 %vm73_vm0, %v48_v53  ;;  %799 = vmatpush3.bf16.msra.mxu1 %v798_v7 }
  0x37   :  { %234 = vmatprep.mubr.f32.mxu0 %v888_v0 }
  0x3a   :  { %622 = vmatmul.mubr.msk.f32.gmra.mrb[16].mxu0 %vm73_vm0, %v49_v54 }
  0x3b   :  { %240 = vmatprep.mubr.f32.mxu0 %v888_v0 }
  0x3e   :  { %623 = vmatmul.mubr.msk.f32.gmra.mrb[18].mxu0 %vm73_vm0, %v50_v55 }
  0x3f   :  { %246 = vmatprep.mubr.f32.mxu0 %v888_v0 }
  0x42   :  { %624 = vmatmul.mubr.msk.f32.gmra.mrb[20].mxu0 %vm73_vm0, %v51_v56 }
  0x43   :  { %252 = vmatprep.mubr.f32.mxu0 %v888_v0 }
  0x46   :  { %625 = vmatmul.mubr.msk.f32.gmra.mrb[22].mxu0 %vm73_vm0, %v52_v57 }
  0x47   :  { %258 = vmatprep.mubr.f32.mxu0 %v888_v0 }
  0x4a   :  { %626 = vmatmul.mubr.msk.f32.gmra.mrb[24].mxu0 %vm73_vm0, %v53_v58 }
  0x4b   :  { %264 = vmatprep.mubr.f32.mxu0 %v888_v0 }
  0x4e   :  { %627 = vmatmul.mubr.msk.f32.gmra.mrb[26].mxu0 %vm73_vm0, %v54_v59 }
  0x4f   :  { %270 = vmatprep.mubr.f32.mxu0 %v888_v0 }
  0x52   :  { %628 = vmatmul.mubr.msk.f32.gmra.mrb[28].mxu0 %vm73_vm0, %v55_v60 }
  0x53   :  { %276 = vmatprep.mubr.f32.mxu0 %v888_v0 }
  0x56   :  { %629 = vmatmul.mubr.msk.f32.gmra.mrb[30].mxu0 %vm73_vm0, %v56_v61 }
  0x57   :  { %761 = vmatprep.mubr.msk.f32.mxu0 %vm890_vm1, %v888_v0 }
  0xed   :  { %v188_v15 = vpop.f32.mrb[0].mxu0 }
  0xee   :  { %v189_v16 = vadd.f32 %v188_v15, %v1040_v13  ;;  %v190_v17 = vpop.f32.mrb[1].mxu0 }
  0xef   :  { %v191_v18 = vadd.f32 %v190_v17, %v1042_v14 }
  0xf0   :  { %v283_v21 = vmax.f32 %v189_v16, 0.0 }
  0xf1   :  { %v194_v19 = vpop.f32.mrb[2].mxu0  ;;  %v284_v20 = vmax.f32 %v191_v18, 0.0 }
  0xf2   :  { %v195_v22 = vadd.f32 %v194_v19, %v1040_v13  ;;  %v196_v23 = vpop.f32.mrb[3].mxu0 }
  0xf3   :  { %v197_v24 = vadd.f32 %v196_v23, %v1042_v14  ;;  %418 = vmatprep.mubr.f32.mxu1 %v284_v20 }
  0xf4   :  { %419 = vmatmul.mubr.f32.vlgmr.msra.gmra.mrb[0].mxu1 %v283_v21  ;;  %v285_v27 = vmax.f32 %v195_v22, 0.0 }
  0xf5   :  { %v286_v25 = vmax.f32 %v197_v24, 0.0  ;;  %v200_v26 = vpop.f32.mrb[4].mxu0 }
  0xf6   :  { %v201_v28 = vadd.f32 %v200_v26, %v1040_v13  ;;  %v202_v29 = vpop.f32.mrb[5].mxu0 }
  0xf7   :  { %v203_v30 = vadd.f32 %v202_v29, %v1042_v14  ;;  %423 = vmatprep.mubr.f32.mxu1 %v286_v25 }
  0xf8   :  { %424 = vmatmul.mubr.f32.gmra.mrb[2].mxu1 %v285_v27  ;;  %v287_v33 = vmax.f32 %v201_v28, 0.0 }
  0xf9   :  { %v288_v31 = vmax.f32 %v203_v30, 0.0  ;;  %v206_v32 = vpop.f32.mrb[6].mxu0 }
  0xfa   :  { %v207_v34 = vadd.f32 %v206_v32, %v1040_v13  ;;  %v208_v35 = vpop.f32.mrb[7].mxu0 }
  0xfb   :  { %v209_v36 = vadd.f32 %v208_v35, %v1042_v14  ;;  %428 = vmatprep.mubr.f32.mxu1 %v288_v31 }
  0xfc   :  { %429 = vmatmul.mubr.f32.gmra.mrb[4].mxu1 %v287_v33  ;;  %v289_v39 = vmax.f32 %v207_v34, 0.0 }
  0xfd   :  { %v290_v37 = vmax.f32 %v209_v36, 0.0  ;;  %v212_v38 = vpop.f32.mrb[8].mxu0 }
  0xfe   :  { %v213_v40 = vadd.f32 %v212_v38, %v1040_v13  ;;  %v214_v41 = vpop.f32.mrb[9].mxu0 }
  0xff   :  { %v215_v42 = vadd.f32 %v214_v41, %v1042_v14  ;;  %433 = vmatprep.mubr.f32.mxu1 %v290_v37 }
 0x100   :  { %434 = vmatmul.mubr.f32.gmra.mrb[6].mxu1 %v289_v39  ;;  %v291_v45 = vmax.f32 %v213_v40, 0.0 }
 0x101   :  { %v292_v43 = vmax.f32 %v215_v42, 0.0  ;;  %v218_v44 = vpop.f32.mrb[10].mxu0 }
 0x102   :  { %v219_v46 = vadd.f32 %v218_v44, %v1040_v13  ;;  %v220_v47 = vpop.f32.mrb[11].mxu0 }
 0x103   :  { %v221_v48 = vadd.f32 %v220_v47, %v1042_v14  ;;  %438 = vmatprep.mubr.f32.mxu1 %v292_v43 }
 0x104   :  { %439 = vmatmul.mubr.f32.gmra.mrb[8].mxu1 %v291_v45  ;;  %v293_v51 = vmax.f32 %v219_v46, 0.0 }
 0x105   :  { %v294_v49 = vmax.f32 %v221_v48, 0.0  ;;  %v224_v50 = vpop.f32.mrb[12].mxu0 }
 0x106   :  { %v225_v52 = vadd.f32 %v224_v50, %v1040_v13  ;;  %v226_v53 = vpop.f32.mrb[13].mxu0  ;;  %v889_v50 = vmov 0.0|0.0  }
 0x107   :  { %v227_v54 = vadd.f32 %v226_v53, %v1042_v14  ;;  %443 = vmatprep.mubr.f32.mxu1 %v294_v49  ;;  %800 = vmatprep.subr.bf16.mxu0 %v889_v50 }
 0x108   :  { %444 = vmatmul.mubr.f32.gmra.mrb[10].mxu1 %v293_v51  ;;  %v295_v57 = vmax.f32 %v225_v52, 0.0  ;;  %v516_v51 = vld [vmem:[%s1130_s6] sm:$0xff] }
 0x109   :  { %v296_v55 = vmax.f32 %v227_v54, 0.0  ;;  %v230_v56 = vpop.f32.mrb[14].mxu0  ;;  %v1084_v54 = vld [vmem:[%s1128_s4] ss:$0 sm:$0xff] }
 0x10a   :  { %v231_v58 = vadd.f32 %v230_v56, %v1040_v13  ;;  %v232_v59 = vpop.f32.mrb[15].mxu0 }
 0x10b   :  { %v233_v60 = vadd.f32 %v232_v59, %v1042_v14  ;;  %448 = vmatprep.mubr.f32.mxu1 %v296_v55 }
 0x10c   :  { %449 = vmatmul.mubr.f32.gmra.mrb[12].mxu1 %v295_v57  ;;  %v297_v63 = vmax.f32 %v231_v58, 0.0 }
 0x10d   :  { %v298_v61 = vmax.f32 %v233_v60, 0.0  ;;  %v236_v62 = vpop.f32.mrb[16].mxu0 }
 0x10e   :  { %v237_v1 = vadd.f32 %v236_v62, %v1040_v13  ;;  %v238_v2 = vpop.f32.mrb[17].mxu0 }
 0x10f   :  { %v239_v3 = vadd.f32 %v238_v2, %v1042_v14  ;;  %453 = vmatprep.mubr.f32.mxu1 %v298_v61 }
 0x110   :  { %454 = vmatmul.mubr.f32.gmra.mrb[14].mxu1 %v297_v63  ;;  %v299_v6 = vmax.f32 %v237_v1, 0.0 }
 0x111   :  { %v300_v4 = vmax.f32 %v239_v3, 0.0  ;;  %v242_v5 = vpop.f32.mrb[18].mxu0 }
 0x112   :  { %v243_v7 = vadd.f32 %v242_v5, %v1040_v13  ;;  %v244_v8 = vpop.f32.mrb[19].mxu0 }
 0x113   :  { %v245_v9 = vadd.f32 %v244_v8, %v1042_v14  ;;  %458 = vmatprep.mubr.f32.mxu1 %v300_v4 }
 0x114   :  { %459 = vmatmul.mubr.f32.gmra.mrb[16].mxu1 %v299_v6  ;;  %v301_v12 = vmax.f32 %v243_v7, 0.0 }
 0x115   :  { %v302_v10 = vmax.f32 %v245_v9, 0.0  ;;  %v248_v11 = vpop.f32.mrb[20].mxu0 }
 0x116   :  { %v249_v15 = vadd.f32 %v248_v11, %v1040_v13  ;;  %v250_v16 = vpop.f32.mrb[21].mxu0 }
 0x117   :  { %v251_v17 = vadd.f32 %v250_v16, %v1042_v14  ;;  %463 = vmatprep.mubr.f32.mxu1 %v302_v10 }
 0x118   :  { %464 = vmatmul.mubr.f32.gmra.mrb[18].mxu1 %v301_v12  ;;  %v303_v20 = vmax.f32 %v249_v15, 0.0 }
 0x119   :  { %v304_v18 = vmax.f32 %v251_v17, 0.0  ;;  %v254_v19 = vpop.f32.mrb[22].mxu0 }
 0x11a   :  { %v255_v21 = vadd.f32 %v254_v19, %v1040_v13  ;;  %v256_v22 = vpop.f32.mrb[23].mxu0 }
 0x11b   :  { %v257_v23 = vadd.f32 %v256_v22, %v1042_v14  ;;  %468 = vmatprep.mubr.f32.mxu1 %v304_v18 }
 0x11c   :  { %469 = vmatmul.mubr.f32.gmra.mrb[20].mxu1 %v303_v20  ;;  %v305_v26 = vmax.f32 %v255_v21, 0.0 }
 0x11d   :  { %v306_v24 = vmax.f32 %v257_v23, 0.0  ;;  %v260_v25 = vpop.f32.mrb[24].mxu0 }
 0x11e   :  { %v261_v27 = vadd.f32 %v260_v25, %v1040_v13  ;;  %v262_v28 = vpop.f32.mrb[25].mxu0 }
 0x11f   :  { %v263_v29 = vadd.f32 %v262_v28, %v1042_v14  ;;  %473 = vmatprep.mubr.f32.mxu1 %v306_v24 }
 0x120   :  { %474 = vmatmul.mubr.f32.gmra.mrb[22].mxu1 %v305_v26  ;;  %v307_v32 = vmax.f32 %v261_v27, 0.0 }
 0x121   :  { %v308_v30 = vmax.f32 %v263_v29, 0.0  ;;  %v266_v31 = vpop.f32.mrb[26].mxu0 }
 0x122   :  { %v267_v33 = vadd.f32 %v266_v31, %v1040_v13  ;;  %v268_v34 = vpop.f32.mrb[27].mxu0 }
 0x123   :  { %v269_v35 = vadd.f32 %v268_v34, %v1042_v14  ;;  %478 = vmatprep.mubr.f32.mxu1 %v308_v30 }
 0x124   :  { %479 = vmatmul.mubr.f32.gmra.mrb[24].mxu1 %v307_v32  ;;  %v309_v38 = vmax.f32 %v267_v33, 0.0 }
 0x125   :  { %v310_v36 = vmax.f32 %v269_v35, 0.0  ;;  %v272_v37 = vpop.f32.mrb[28].mxu0 }
 0x126   :  { %v273_v39 = vadd.f32 %v272_v37, %v1040_v13  ;;  %v274_v40 = vpop.f32.mrb[29].mxu0 }
 0x127   :  { %v275_v41 = vadd.f32 %v274_v40, %v1042_v14  ;;  %483 = vmatprep.mubr.f32.mxu1 %v310_v36 }
 0x128   :  { %484 = vmatmul.mubr.f32.gmra.mrb[26].mxu1 %v309_v38  ;;  %v311_v44 = vmax.f32 %v273_v39, 0.0 }
 0x129   :  { %v312_v42 = vmax.f32 %v275_v41, 0.0  ;;  %v278_v43 = vpop.f32.mrb[30].mxu0 }
 0x12a   :  { %v279_v45 = vadd.f32 %v278_v43, %v1040_v13  ;;  %v280_v46 = vpop.f32.mrb[31].mxu0  ;;  %v891_v13 = vmov 0  }
 0x12b   :  { %v281_v47 = vadd.f32 %v280_v46, %v1042_v14  ;;  %488 = vmatprep.mubr.f32.mxu1 %v312_v42  ;;  %832 = vset.pattern.permute.xlu0 %v891_v13 }
 0x12c   :  { %489 = vmatmul.mubr.f32.gmra.mrb[28].mxu1 %v311_v44  ;;  %v313_v49 = vmax.f32 %v279_v45, 0.0  ;;  %519 = vperm.xlu0 %832, %v516_v51  }
 0x12d   :  { %v314_v48 = vmax.f32 %v281_v47, 0.0 }
 0x12f   :  { %493 = vmatprep.mubr.f32.mxu1 %v314_v48 }
 0x130   :  { %494 = vmatmul.mubr.f32.gmra.mrb[30].mxu1 %v313_v49 }
 0x1c7   :  { %v664_v14 = vpop.f32.mrb[0].mxu1 }
 0x1c8   :  { %v665_v52 = vpop.f32.mrb[1].mxu1 }
 0x1c9   :  { %v666_v53 = vadd.f32 %v665_v52, %v664_v14 }
 0x1cb   :  { %v667_v55 = vpop.f32.mrb[2].mxu1  ;;  %v421_v57 = vadd.f32 %v666_v53, %v1084_v54 }
 0x1cc   :  { %v668_v56 = vpop.f32.mrb[3].mxu1 }
 0x1cd   :  { %v669_v0 = vadd.f32 %v668_v56, %v667_v55  ;;  %v499_v61 = vmax.f32 %v421_v57, 0.0 }
 0x1cf   :  { %v426_v58 = vadd.f32 %v669_v0, %v1084_v54  ;;  %v670_v59 = vpop.f32.mrb[4].mxu1 }
 0x1d0   :  { %v671_v60 = vpop.f32.mrb[5].mxu1 }
 0x1d1   :  { %v500_v62 = vmax.f32 %v426_v58, 0.0  ;;  %v672_v63 = vadd.f32 %v671_v60, %v670_v59 }
 0x1d3   :  { %v801_v1 = vpack.c.bf16 %v500_v62, %v499_v61  ;;  %v673_v2 = vpop.f32.mrb[6].mxu1  ;;  %v431_v4 = vadd.f32 %v672_v63, %v1084_v54 }
 0x1d4   :  { %v674_v3 = vpop.f32.mrb[7].mxu1 }
 0x1d5   :  { %v675_v5 = vadd.f32 %v674_v3, %v673_v2  ;;  %802 = vmatpush3.bf16.xpose.msra.mxu0 %v801_v1  ;;  %v501_v9 = vmax.f32 %v431_v4, 0.0 }
 0x1d6   :  { %803 = vmatprep.subr.bf16.mxu0 %v889_v50 }
 0x1d7   :  { %v436_v6 = vadd.f32 %v675_v5, %v1084_v54  ;;  %v676_v7 = vpop.f32.mrb[8].mxu1 }
 0x1d8   :  { %v677_v8 = vpop.f32.mrb[9].mxu1 }
 0x1d9   :  { %v502_v10 = vmax.f32 %v436_v6, 0.0  ;;  %v678_v11 = vadd.f32 %v677_v8, %v676_v7 }
 0x1db   :  { %v804_v12 = vpack.c.bf16 %v502_v10, %v501_v9  ;;  %v679_v15 = vpop.f32.mrb[10].mxu1  ;;  %v441_v17 = vadd.f32 %v678_v11, %v1084_v54 }
 0x1dc   :  { %v680_v16 = vpop.f32.mrb[11].mxu1 }
 0x1dd   :  { %v681_v18 = vadd.f32 %v680_v16, %v679_v15  ;;  %805 = vmatpush3.bf16.xpose.msra.mxu0 %v804_v12  ;;  %v503_v22 = vmax.f32 %v441_v17, 0.0  ;;  %v515_v16 = vld [vmem:[%s1129_s5] sm:$0xff]  ;;  %v520_v17 = vpop.permute.xlu0 %519 }
 0x1de   :  { %806 = vmatprep.subr.bf16.mxu0 %v889_v50 }
 0x1df   :  { %v446_v19 = vadd.f32 %v681_v18, %v1084_v54  ;;  %v682_v20 = vpop.f32.mrb[12].mxu1 }
 0x1e0   :  { %v683_v21 = vpop.f32.mrb[13].mxu1 }
 0x1e1   :  { %v504_v23 = vmax.f32 %v446_v19, 0.0  ;;  %v684_v24 = vadd.f32 %v683_v21, %v682_v20 }
 0x1e3   :  { %v807_v25 = vpack.c.bf16 %v504_v23, %v503_v22  ;;  %v685_v26 = vpop.f32.mrb[14].mxu1  ;;  %v451_v28 = vadd.f32 %v684_v24, %v1084_v54 }
 0x1e4   :  { %v686_v27 = vpop.f32.mrb[15].mxu1 }
 0x1e5   :  { %v687_v29 = vadd.f32 %v686_v27, %v685_v26  ;;  %808 = vmatpush3.bf16.xpose.msra.mxu0 %v807_v25  ;;  %v505_v33 = vmax.f32 %v451_v28, 0.0 }
 0x1e6   :  { %809 = vmatprep.subr.bf16.mxu0 %v889_v50 }
 0x1e7   :  { %v456_v30 = vadd.f32 %v687_v29, %v1084_v54  ;;  %v688_v31 = vpop.f32.mrb[16].mxu1 }
 0x1e8   :  { %v689_v32 = vpop.f32.mrb[17].mxu1 }
 0x1e9   :  { %v506_v34 = vmax.f32 %v456_v30, 0.0  ;;  %v690_v35 = vadd.f32 %v689_v32, %v688_v31 }
 0x1eb   :  { %v810_v36 = vpack.c.bf16 %v506_v34, %v505_v33  ;;  %v691_v37 = vpop.f32.mrb[18].mxu1  ;;  %v461_v39 = vadd.f32 %v690_v35, %v1084_v54 }
 0x1ec   :  { %v692_v38 = vpop.f32.mrb[19].mxu1 }
 0x1ed   :  { %v693_v40 = vadd.f32 %v692_v38, %v691_v37  ;;  %811 = vmatpush3.bf16.xpose.msra.mxu0 %v810_v36  ;;  %v507_v44 = vmax.f32 %v461_v39, 0.0 }
 0x1ee   :  { %812 = vmatprep.subr.bf16.mxu0 %v889_v50 }
 0x1ef   :  { %v466_v41 = vadd.f32 %v693_v40, %v1084_v54  ;;  %v694_v42 = vpop.f32.mrb[20].mxu1 }
 0x1f0   :  { %v695_v43 = vpop.f32.mrb[21].mxu1 }
 0x1f1   :  { %v508_v45 = vmax.f32 %v466_v41, 0.0  ;;  %v696_v46 = vadd.f32 %v695_v43, %v694_v42 }
 0x1f3   :  { %v813_v47 = vpack.c.bf16 %v508_v45, %v507_v44  ;;  %v697_v48 = vpop.f32.mrb[22].mxu1  ;;  %v471_v51 = vadd.f32 %v696_v46, %v1084_v54 }
 0x1f4   :  { %v698_v49 = vpop.f32.mrb[23].mxu1 }
 0x1f5   :  { %v699_v13 = vadd.f32 %v698_v49, %v697_v48  ;;  %814 = vmatpush3.bf16.xpose.msra.mxu0 %v813_v47  ;;  %v509_v55 = vmax.f32 %v471_v51, 0.0 }
 0x1f6   :  { %815 = vmatprep.subr.bf16.mxu0 %v889_v50 }
 0x1f7   :  { %v476_v14 = vadd.f32 %v699_v13, %v1084_v54  ;;  %v700_v52 = vpop.f32.mrb[24].mxu1 }
 0x1f8   :  { %v701_v53 = vpop.f32.mrb[25].mxu1 }
 0x1f9   :  { %v510_v56 = vmax.f32 %v476_v14, 0.0  ;;  %v702_v57 = vadd.f32 %v701_v53, %v700_v52 }
 0x1fb   :  { %v816_v0 = vpack.c.bf16 %v510_v56, %v509_v55  ;;  %v703_v58 = vpop.f32.mrb[26].mxu1  ;;  %v481_v60 = vadd.f32 %v702_v57, %v1084_v54 }
 0x1fc   :  { %v704_v59 = vpop.f32.mrb[27].mxu1 }
 0x1fd   :  { %v705_v61 = vadd.f32 %v704_v59, %v703_v58  ;;  %817 = vmatpush3.bf16.xpose.msra.mxu0 %v816_v0  ;;  %v511_v2 = vmax.f32 %v481_v60, 0.0 }
 0x1fe   :  { %818 = vmatprep.subr.bf16.mxu0 %v889_v50 }
 0x1ff   :  { %v486_v62 = vadd.f32 %v705_v61, %v1084_v54  ;;  %v706_v63 = vpop.f32.mrb[28].mxu1 }
 0x200   :  { %v707_v1 = vpop.f32.mrb[29].mxu1 }
 0x201   :  { %v512_v3 = vmax.f32 %v486_v62, 0.0  ;;  %v708_v4 = vadd.f32 %v707_v1, %v706_v63 }
 0x203   :  { %v819_v5 = vpack.c.bf16 %v512_v3, %v511_v2  ;;  %v709_v6 = vpop.f32.mrb[30].mxu1  ;;  %v491_v8 = vadd.f32 %v708_v4, %v1084_v54 }
 0x204   :  { %v710_v7 = vpop.f32.mrb[31].mxu1 }
 0x205   :  { %v711_v9 = vadd.f32 %v710_v7, %v709_v6  ;;  %820 = vmatpush3.bf16.xpose.msra.mxu0 %v819_v5  ;;  %v513_v11 = vmax.f32 %v491_v8, 0.0 }
 0x206   :  { %821 = vmatprep.subr.bf16.mxu0 %v889_v50 }
 0x207   :  { %v496_v10 = vadd.f32 %v711_v9, %v1084_v54 }
 0x209   :  { %v514_v12 = vmax.f32 %v496_v10, 0.0 }
 0x20b   :  { %v822_v15 = vpack.c.bf16 %v514_v12, %v513_v11 }
 0x20d   :  { %823 = vmatpush3.bf16.xpose.msra.mxu0 %v822_v15 }
 0x214   :  { %762 = vmatmul.mubr.f32.vlgmr.msra.gmra.mrb[32].mxu0 %v515_v16 }
 0x2e7   :  { %v588_v18 = vpop.f32.mrb[32].mxu0 }
 0x2e8   :  { %v589_v19 = vadd.f32 %v588_v18, %v520_v17  ;;  %v763_v20 = vpop.f32.mrb[33].mxu0 }
 0x2ea   :  { %v631_v21 = vmul.f32 -1.442695, %v589_v19 }
 0x2ec   :  { %833 = vpow2.f32 %v631_v21 }
 0x2f6   :  { %v834_v22 = vpop.eup %833 }
 0x2f7   :  { %v595_v23 = vadd.f32 1.0, %v834_v22 }
 0x2f9   :  { %835 = vrcp.f32 %v595_v23 }
 0x303   :  { %v836_v50 = vpop.eup %835 }
 0x304   :  { %598 = vst [vmem:[#allocation5] sm:$0x3] %v836_v50 }
 0x305   :  { %870 = shalt.err (!%p867_p12)
}
 0x306   :  { %s871_s13 = scalar_lea.hbm %s1131_s7, 32 }
 0x307   :  { %p872_p13 = scmp.ne.s32.totalorder %s1131_s7, %s871_s13  ;;  %p875_p0 = scmp.lt.u32.totalorder %s871_s13, %s1131_s7 }
 0x309   :  { %p877_p1 = pnand %p875_p0, %p872_p13 }
 0x30b   :  { %880 = shalt.err (!%p877_p1)
}
 0x30c   :  { %608 = dma.vmem_to_hbm [thread:$0]  %s606_s10, 32, %s1131_s7, [#allocation4]  }
 0x30d   :  { %883 = dma.done.wait [#allocation4], 32  }
 0x30e   :  { %884 = vsyncadd [#allocation4], 4294967264 }
 0x30f   :  { %612 = vsyncpa [#allocation3], 1 }
 0x310   :  { %613 = vsyncpa [#allocation4], 1 }

</bundles_post_ra>
